<compile_context>
chip_gen: v7x
topology: tpu7x:2x2x1
jax: 0.10.0
libtpu: 0.0.40
codegen_flags: <defaults>
</compile_context>

<pallas_src>
import functools

import jax
import jax.numpy as jnp
from jax.experimental import pallas as pl
from jax.experimental.pallas import tpu as pltpu


def _accuracy_kernel(logits_ref, labels_ref, out_ref, *,
                     total_n, tile_n, tiles_per_split):
    # logits_ref: (tile_n, C) native dtype in VMEM
    # labels_ref: (tile_n, 1) int32      in VMEM
    # out_ref:    (8, 128)    int32      in VMEM (per-split resident partial)
    p = pl.program_id(0)   # TC split (parallel)
    i = pl.program_id(1)   # row-tile within the split (arbitrary / resident)

    @pl.when(i == 0)
    def _init():
        out_ref[...] = jnp.zeros_like(out_ref)

    # Native-dtype math: max / equality are exact in bf16 and f32 alike.
    logits = logits_ref[...]                                # (tn, C)
    labels = labels_ref[...]                                # (tn, 1) int32
    tn, c = logits.shape

    # First-occurrence argmax folded with the label compare:
    #   argmax(row) == label  <=>  min over {lanes where logit == row_max}
    #                              of (col_id - label) == 0
    row_max = jnp.max(logits, axis=1, keepdims=True)                     # (tn, 1)
    col_ids = jax.lax.broadcasted_iota(jnp.int32, (tn, c), 1)            # (tn, C)
    diff = jnp.where(logits == row_max, col_ids - labels, jnp.int32(c))  # sentinel c
    min_diff = jnp.min(diff, axis=1, keepdims=True)                      # (tn, 1)

    # Global row offset of this tile, computed from the UNclamped tile index
    # (the index_map clamps overflow tiles to the last block; this mask zeroes
    # both the ragged tail of the last block and any clamped overflow tile).
    tile_idx = p * tiles_per_split + i
    row_ids = jax.lax.broadcasted_iota(jnp.int32, (tn, 1), 0)
    valid = (tile_idx * tile_n + row_ids) < total_n

    correct = jnp.logical_and(min_diff == 0, valid).astype(jnp.int32)    # (tn, 1)
    partial = jnp.sum(correct)                                           # i32 scalar

    # Exact int32 accumulation into element [0, 0] of this split's partial block.
    r8 = jax.lax.broadcasted_iota(jnp.int32, (8, 128), 0)
    c128 = jax.lax.broadcasted_iota(jnp.int32, (8, 128), 1)
    out_ref[...] += jnp.where((r8 == 0) & (c128 == 0), partial, jnp.int32(0))


def _round_up(x, m):
    return ((x + m - 1) // m) * m


def _vmem_capacity_bytes():
    """Physical VMEM of the local chip; conservative fallback if unavailable."""
    try:
        return int(pltpu.get_tpu_info().vmem_capacity_bytes)
    except Exception:  # pragma: no cover - fallback works on every generation
        return 64 * 1024 * 1024


def _choose_tile_n(n, c, itemsize, vmem_limit):
    """Pick a row-tile: multiple of 8, sized so that the double-buffered
    native logits blocks plus the (tn, C) int32 compare/argmin intermediates
    use ~half of the scoped VMEM limit (headroom for labels/output/compiler).
    """
    budget = vmem_limit // 2
    bytes_per_row = (2 * itemsize + 8) * max(1, c)   # 2 buffers + ~2x i32 temps
    rows = budget // bytes_per_row
    rows = max(8, (rows // 8) * 8)
    rows = min(rows, _round_up(n, 8))
    return int(rows)


def accuracy_score(y_pred: jax.Array, y: jax.Array,
                   tile_n: int | None = None) -> jax.Array:
    """Pallas equivalent of Classifier.accuracy_score(y_pred, y, averaged=True)."""
    n, c = y_pred.shape
    labels = jnp.asarray(y).reshape(n, 1).astype(jnp.int32)
    itemsize = jnp.dtype(y_pred.dtype).itemsize

    vmem_cap = _vmem_capacity_bytes()
    vmem_limit = int(vmem_cap * 3 // 4)          # 96 MiB v5e/v6e, 48 MiB v7x

    if tile_n is None:
        tile_n = _choose_tile_n(n, c, itemsize, vmem_limit)
    else:
        tile_n = max(8, min(_round_up(int(tile_n), 8), _round_up(n, 8)))

    num_tiles = pl.cdiv(n, tile_n)
    num_splits = 2 if num_tiles >= 2 else 1      # 2-TC sharding on v7x
    tiles_per_split = pl.cdiv(num_tiles, num_splits)

    kernel = functools.partial(_accuracy_kernel, total_n=n, tile_n=tile_n,
                               tiles_per_split=tiles_per_split)

    def tile_map(p, i):
        # Clamp overflow tiles (when num_tiles is odd / splits uneven) to the
        # last real block; the in-kernel validity mask discards their rows.
        return (jnp.minimum(p * tiles_per_split + i, num_tiles - 1), 0)

    out = pl.pallas_call(
        kernel,
        out_shape=jax.ShapeDtypeStruct((8 * num_splits, 128), jnp.int32),
        grid_spec=pltpu.PrefetchScalarGridSpec(
            num_scalar_prefetch=0,
            grid=(num_splits, tiles_per_split),
            in_specs=[
                pl.BlockSpec((tile_n, c), tile_map),   # logits, native dtype
                pl.BlockSpec((tile_n, 1), tile_map),   # labels int32
            ],
            out_specs=pl.BlockSpec((8, 128), lambda p, i: (p, 0)),
        ),
        compiler_params=pltpu.CompilerParams(
            dimension_semantics=("parallel", "arbitrary"),
            vmem_limit_bytes=vmem_limit,
        ),
        cost_estimate=pl.CostEstimate(
            flops=5 * n * c,
            transcendentals=0,
            bytes_accessed=n * c * itemsize + n * 4 + 8 * num_splits * 128 * 4,
        ),
    )(y_pred, labels)

    correct = jnp.sum(out)                        # exact int32 total count
    return correct.astype(jnp.float32) / jnp.float32(n)


# TODO(synk): forward / loss / predict / configure_optimizer / train_step are
# abstract (raise NotImplementedError) in the reference module; no kernel is
# emitted for them.  checkpoint/load_check are file I/O and are out of scope.


if __name__ == "__main__":
    key = jax.random.PRNGKey(0)
    k1, k2, k3, k4 = jax.random.split(key, 4)

    # Case 1: small batch, 128 classes, f32 logits (single tile, single split).
    N1, C1 = 8, 128
    logits1 = jax.random.normal(k1, (N1, C1), dtype=jnp.float32)
    y1 = jax.random.randint(k2, (N1,), 0, C1, dtype=jnp.int32)
    acc1 = jax.block_until_ready(accuracy_score(logits1, y1))
    ref1 = jnp.mean(
        (jnp.argmax(logits1, axis=1).astype(y1.dtype) == y1).astype(jnp.float32))
    assert jnp.allclose(acc1, ref1), (acc1, ref1)

    # Case 2: non-multiple-of-8 batch, small (non-128) class count, bf16 logits,
    # forced small tile -> exercises multi-tile accumulation, the 2-split
    # parallel axis, the clamped overflow tile, and the ragged last tile.
    N2, C2 = 300, 10
    logits2 = jax.random.normal(k3, (N2, C2), dtype=jnp.float32).astype(jnp.bfloat16)
    y2 = jax.random.randint(k4, (N2,), 0, C2, dtype=jnp.int32)
    acc2 = jax.block_until_ready(accuracy_score(logits2, y2, tile_n=64))
    ref2 = jnp.mean(
        (jnp.argmax(logits2, axis=1).astype(y2.dtype) == y2).astype(jnp.float32))
    assert jnp.allclose(acc2, ref2), (acc2, ref2)

    print("KERNEL_OK")
</pallas_src>

<mosaic_0001>
module attributes {stable_mosaic.version = 11 : i64} {
  func.func @_accuracy_kernel(%arg0: i32, %arg1: i32, %arg2: memref<8x128xf32, #tpu.memory_space<vmem>>, %arg3: memref<8x1xi32, #tpu.memory_space<vmem>>, %arg4: memref<8x128xi32, #tpu.memory_space<vmem>>) attributes {dimension_semantics = [#tpu.dimension_semantics<parallel>, #tpu.dimension_semantics<arbitrary>], iteration_bounds = array<i64: 1, 1>, scalar_prefetch = 0 : i64, scratch_operands = 0 : i64, tpu.core_type = #tpu.core_type<tc>, window_params = [{transform_indices = @transform_0, window_bounds = array<i64: 8, 128>}, {transform_indices = @transform_1, window_bounds = array<i64: 8, 1>}, {transform_indices = @transform_2, window_bounds = array<i64: 8, 128>}]} {
    %c0_i32 = arith.constant 0 : i32
    %0 = arith.cmpi eq, %arg1, %c0_i32 : i32
    %1 = arith.extui %0 : i1 to i32
    %c0_i32_0 = arith.constant 0 : i32
    %2 = arith.cmpi ne, %1, %c0_i32_0 : i32
    scf.if %2 {
      %c0_i32_15 = arith.constant 0 : i32
      %45 = vector.broadcast %c0_i32_15 : i32 to vector<8x128xi32>
      %c0_16 = arith.constant 0 : index
      %c0_17 = arith.constant 0 : index
      %46 = vector.load %arg4[%c0_16, %c0_17] : memref<8x128xi32, #tpu.memory_space<vmem>>, vector<8x128xi32>
      tpu.vector_store %arg4[%c0_16, %c0_17], %45 {strides = array<i32>} : memref<8x128xi32, #tpu.memory_space<vmem>>, vector<8x128xi32>,
    } else {
    }
    %c0 = arith.constant 0 : index
    %c0_1 = arith.constant 0 : index
    %3 = vector.load %arg2[%c0, %c0_1] : memref<8x128xf32, #tpu.memory_space<vmem>>, vector<8x128xf32>
    %c0_2 = arith.constant 0 : index
    %c0_3 = arith.constant 0 : index
    %4 = vector.load %arg3[%c0_2, %c0_3] : memref<8x1xi32, #tpu.memory_space<vmem>>, vector<8x1xi32>
    %cst = arith.constant dense<0xFF800000> : vector<8xf32>
    %5 = vector.multi_reduction <maximumf>, %3, %cst [1] : vector<8x128xf32> to vector<8xf32>
    %6 = vector.shape_cast %5 : vector<8xf32> to vector<8x1xf32>
    %7 = tpu.iota {dimensions = array<i32: 1>} : vector<8x128xi32>
    %8 = vector.broadcast %6 : vector<8x1xf32> to vector<8x128xf32>
    %9 = arith.cmpf oeq, %3, %8 : vector<8x128xf32>
    %10 = vector.broadcast %4 : vector<8x1xi32> to vector<8x128xi32>
    %11 = arith.subi %7, %10 : vector<8x128xi32>
    %c128_i32 = arith.constant 128 : i32
    %12 = vector.broadcast %c128_i32 : i32 to vector<8x128xi32>
    %13 = arith.select %9, %11, %12 : vector<8x128xi1>, vector<8x128xi32>
    %cst_4 = arith.constant dense<2147483647> : vector<8xi32>
    %14 = vector.multi_reduction <minsi>, %13, %cst_4 [1] : vector<8x128xi32> to vector<8xi32>
    %15 = vector.shape_cast %14 : vector<8xi32> to vector<8x1xi32>
    %c1_i32 = arith.constant 1 : i32
    %16 = arith.muli %arg0, %c1_i32 : i32
    %17 = arith.addi %16, %arg1 : i32
    %18 = tpu.iota {dimensions = array<i32: 0>} : vector<8x1xi32>
    %c8_i32 = arith.constant 8 : i32
    %19 = arith.muli %17, %c8_i32 : i32
    %20 = vector.broadcast %19 : i32 to vector<8x1xi32>
    %21 = arith.addi %20, %18 : vector<8x1xi32>
    %c8_i32_5 = arith.constant 8 : i32
    %22 = vector.broadcast %c8_i32_5 : i32 to vector<8x1xi32>
    %23 = arith.cmpi slt, %21, %22 : vector<8x1xi32>
    %c0_i32_6 = arith.constant 0 : i32
    %24 = vector.broadcast %c0_i32_6 : i32 to vector<8x1xi32>
    %25 = arith.cmpi eq, %15, %24 : vector<8x1xi32>
    %26 = arith.andi %25, %23 : vector<8x1xi1>
    %27 = arith.extui %26 : vector<8x1xi1> to vector<8x1xi32>
    %28 = vector.shape_cast %27 : vector<8x1xi32> to vector<1x8x1xi32>
    %cst_7 = arith.constant dense<0> : vector<1xi32>
    %29 = vector.multi_reduction <add>, %28, %cst_7 [1, 2] : vector<1x8x1xi32> to vector<1xi32>
    %30 = vector.shape_cast %29 : vector<1xi32> to vector<1x1x1xi32>
    %31 = vector.extract %30[0, 0, 0] : i32 from vector<1x1x1xi32>
    %32 = tpu.iota {dimensions = array<i32: 0>} : vector<8x128xi32>
    %33 = tpu.iota {dimensions = array<i32: 1>} : vector<8x128xi32>
    %c0_8 = arith.constant 0 : index
    %c0_9 = arith.constant 0 : index
    %34 = vector.load %arg4[%c0_8, %c0_9] : memref<8x128xi32, #tpu.memory_space<vmem>>, vector<8x128xi32>
    %c0_i32_10 = arith.constant 0 : i32
    %35 = vector.broadcast %c0_i32_10 : i32 to vector<8x128xi32>
    %36 = arith.cmpi eq, %32, %35 : vector<8x128xi32>
    %c0_i32_11 = arith.constant 0 : i32
    %37 = vector.broadcast %c0_i32_11 : i32 to vector<8x128xi32>
    %38 = arith.cmpi eq, %33, %37 : vector<8x128xi32>
    %39 = arith.andi %36, %38 : vector<8x128xi1>
    %c0_i32_12 = arith.constant 0 : i32
    %40 = vector.broadcast %31 : i32 to vector<8x128xi32>
    %41 = vector.broadcast %c0_i32_12 : i32 to vector<8x128xi32>
    %42 = arith.select %39, %40, %41 : vector<8x128xi1>, vector<8x128xi32>
    %43 = arith.addi %34, %42 : vector<8x128xi32>
    %c0_13 = arith.constant 0 : index
    %c0_14 = arith.constant 0 : index
    %44 = vector.load %arg4[%c0_13, %c0_14] : memref<8x128xi32, #tpu.memory_space<vmem>>, vector<8x128xi32>
    tpu.vector_store %arg4[%c0_13, %c0_14], %43 {strides = array<i32>} : memref<8x128xi32, #tpu.memory_space<vmem>>, vector<8x128xi32>,
    return
  }
  func.func @transform_0(%arg0: i32, %arg1: i32) -> (i32, i32) {
    %c1_i32 = arith.constant 1 : i32
    %0 = arith.muli %arg0, %c1_i32 : i32
    %1 = arith.addi %0, %arg1 : i32
    %c0_i32 = arith.constant 0 : i32
    %2 = arith.minsi %1, %c0_i32 : i32
    %c0_i32_0 = arith.constant 0 : i32
    %c0_i32_1 = arith.constant 0 : i32
    return %2, %c0_i32_0 : i32, i32
  }
  func.func @transform_1(%arg0: i32, %arg1: i32) -> (i32, i32) {
    %c1_i32 = arith.constant 1 : i32
    %0 = arith.muli %arg0, %c1_i32 : i32
    %1 = arith.addi %0, %arg1 : i32
    %c0_i32 = arith.constant 0 : i32
    %2 = arith.minsi %1, %c0_i32 : i32
    %c0_i32_0 = arith.constant 0 : i32
    %c0_i32_1 = arith.constant 0 : i32
    return %2, %c0_i32_0 : i32, i32
  }
  func.func @transform_2(%arg0: i32, %arg1: i32) -> (i32, i32) {
    %c0_i32 = arith.constant 0 : i32
    %c0_i32_0 = arith.constant 0 : i32
    return %arg0, %c0_i32 : i32, i32
  }
}

</mosaic_0001>

<bundles_post_ra>
// kernel: tpu_custom_call.1
= control target key start
LH: loop header
LB: loop body
LE: loop exit
PB: predicated region body
PF: predicated region fallthrough
CT: control target
= control target key end

     0   :  { %s212_s0 = inlined_call_operand.vmem [shape: f32[8,128], index: 0, kind: input, shape index: {}]   ;;  %s213_s1 = inlined_call_operand.vmem [shape: s32[8,1], index: 1, kind: input, shape index: {}]   ;;  %s214_s2 = inlined_call_operand.hbm [shape: s32[8,128], index: 2, kind: output, shape index: {}]  }
   0x1   :  { %v71_v0 = vld [vmem:[%s212_s0] sm:$0xff] }
   0x2   :  { %7 = vsyncpa [#allocation3], 0  ;;  %73 = vmax.xlane.f32.xlu0 %v71_v0  ;;  %v177_v1 = vmov 0   ;;  %v72_v2 = vld [vmem:[%s213_s1] sm:$0xff]  ;;  %v75_v3 = vlaneseq  ;;  %s178_s1 = smov [#allocation2]  }
   0x3   :  { %152 = vset.pattern.permute.xlu0 %v177_v1  ;;  %s128_s13 = sshll.u32 %s178_s1, 4  ;;  %s129_s13 = int_to_ptr.vmem [resolvable:$true] %s128_s13 }
   0x4   :  { %v76_v5 = vand.u32 127, %v75_v3  ;;  %v99_v27 = vshrl.u32 %v75_v3, 7  ;;  %s153_s14 = scalar_lea.vmem %s129_s13, 128  ;;  %p158_p1 = scmp.lt.s32.totalorder %s129_s13, %s129_s13 }
   0x5   :  { %p154_p0 = scmp.ne.s32.totalorder %s129_s13, %s153_s14  ;;  %p159_p2 = scmp.lt.s32.totalorder %s153_s14, %s153_s14 }
   0x6   :  { %vm115_vm3 = vcmp.eq.s32.totalorder %v99_v27, 0  ;;  %vm116_vm4 = vcmp.eq.s32.totalorder %v76_v5, 0 }
   0x7   :  { %vm117_vm5 = vmand %vm115_vm3, %vm116_vm4  ;;  %p160_p3 = por %p159_p2, %p158_p1 }
   0x9   :  { %p161_p4 = pnand %p160_p3, %p154_p0 }
  0x18   :  { %79 = vperm.xlu0 %152, %v72_v2  }
  0x8f   :  { %v74_v4 = vpop.xlane.xlu0 %73 }
  0x90   :  { %vm77_vm0 = vcmp.eq.f32.partialorder %v71_v0, %v74_v4 }
  0x97   :  { %v80_v6 = vpop.permute.xlu0 %79 }
  0x98   :  { %v81_v7 = vsub.s32 %v76_v5, %v80_v6 }
  0x9a   :  { %v82_v8 = vsel %vm77_vm0, %v81_v7, 128 }
  0x9b   :  { %v84_v9 = vshra.s32 %v82_v8, 16  ;;  %v83_v11 = vand.u32 65535, %v82_v8 }
  0x9d   :  { %v86_v10 = vcvt.s32.f32 %v84_v9  ;;  %v85_v13 = vcvt.s32.f32 %v83_v11 }
  0x9f   :  { %87 = vmin.xlane.f32.xlu1 %v86_v10 }
 0x12c   :  { %v88_v12 = vpop.xlane.xlu1 %87 }
 0x12d   :  { %vm89_vm1 = vcmp.eq.f32.partialorder %v86_v10, %v88_v12  ;;  %v94_v15 = vcvt.f32.s32 %v88_v12 }
 0x12e   :  { %v90_v14 = vsel %vm89_vm1, %v85_v13, inf }
 0x12f   :  { %91 = vmin.xlane.f32.xlu1 %v90_v14  ;;  %v95_v17 = vshll.u32 %v94_v15, 16 }
 0x1bc   :  { %v92_v16 = vpop.xlane.xlu1 %91 }
 0x1bd   :  { %v93_v18 = vcvt.f32.s32 %v92_v16 }
 0x1bf   :  { %v96_v19 = vadd.s32 %v95_v17, %v93_v18 }
 0x1c1   :  { %vm104_vm2 = vcmp.eq.s32.totalorder %v96_v19, 0 }
 0x1c2   :  { %v106_v20 = vsel %vm104_vm2, 1, %v177_v1 }
 0x1c3   :  { %v107_v21 = vrot.slane %v106_v20, 4 }
 0x1c5   :  { %v108_v22 = vadd.s32 %v107_v21, %v106_v20 }
 0x1c7   :  { %v109_v23 = vrot.slane %v108_v22, 2 }
 0x1c9   :  { %v110_v24 = vadd.s32 %v109_v23, %v108_v22 }
 0x1cb   :  { %v111_v25 = vrot.slane %v110_v24, 1 }
 0x1cd   :  { %v112_v26 = vadd.s32 %v111_v25, %v110_v24 }
 0x1cf   :  { %148 = vpush %v112_v26 }
 0x200   :  { %s149_s0 = spop %148 }
 0x201   :  { %v118_v28 = vstv %s149_s0 }
 0x202   :  { %v119_v29 = vsel %vm117_vm5, %v118_v28, 0 }
 0x203   :  { %121 = vst [vmem:[#allocation2] sm:$0xff] %v119_v29 }
 0x204   :  { %164 = shalt.err (!%p161_p4)
}
 0x205   :  { %s165_s17 = scalar_lea.hbm %s214_s2, 128 }
 0x206   :  { %p166_p5 = scmp.ne.s32.totalorder %s214_s2, %s165_s17  ;;  %p169_p6 = scmp.lt.u32.totalorder %s165_s17, %s214_s2 }
 0x208   :  { %p171_p7 = pnand %p169_p6, %p166_p5 }
 0x20a   :  { %174 = shalt.err (!%p171_p7)
}
 0x20b   :  { %131 = dma.vmem_to_hbm [thread:$0]  %s129_s13, 128, %s214_s2, [#allocation3]  }
 0x20c   :  { %175 = dma.done.wait [#allocation3], 128  }
 0x20d   :  { %176 = vsyncadd [#allocation3], 4294967168 }
 0x20e   :  { %135 = vsyncpa [#allocation3], 1 }

</bundles_post_ra>
